<compile_context>
chip_gen: v6e
topology: v6e:2x2x1
jax: 0.10.0
libtpu: 0.0.40
codegen_flags: <defaults>
</compile_context>

<pallas_src>
import jax
import jax.numpy as jnp
from jax.experimental import pallas as pl
from jax.experimental.pallas import tpu as pltpu


# ----------------------------------------------------------------------------- kernel
def latent_oracle_kernel(x_ref, w1_ref, b1_ref, scale_ref, shift_ref,
                         w2_ref, b2_ref, o_ref):
    # x_ref    : (TB, F_in)    VMEM   (batch tile, changes per grid step)
    # w1_ref   : (F_in, H)     VMEM   (resident)
    # b1_ref   : (1, H)        VMEM   (resident)
    # scale_ref: (1, H)        VMEM   (resident)  gamma / sqrt(var + eps)
    # shift_ref: (1, H)        VMEM   (resident)  beta - mean * scale
    # w2_ref   : (H, N_pad)    VMEM   (resident)  head weight, zero-padded to 128 lanes
    # b2_ref   : (1, N_pad)    VMEM   (resident)
    # o_ref    : (TB, N_pad)   VMEM   lane-dense output tile
    x = x_ref[...]

    # Layer 1: x @ W1 + b1   (MXU, f32 accumulate)
    h = jnp.dot(x, w1_ref[...], preferred_element_type=jnp.float32)
    h = h + b1_ref[...]

    # BatchNorm1d (eval, folded affine) + ReLU on the VPU
    h = h * scale_ref[...] + shift_ref[...]
    h = jnp.maximum(h, 0.0)

    # Head: h @ W2_pad + b2_pad  (only lane 0 is meaningful; padding keeps store dense)
    y = jnp.dot(h, w2_ref[...], preferred_element_type=jnp.float32)
    y = y + b2_ref[...]

    o_ref[...] = y.astype(o_ref.dtype)


# ------------------------------------------------------------------- param preparation
def prepare_latent_oracle_params(w1, b1, gamma, beta, running_mean, running_var,
                                 w_head, b_head, eps=1e-5, out_pad=128):
    """One-time prep (hoisted off the per-call path):
    - transpose weights to (in, out)
    - fold BatchNorm1d running stats into per-channel scale/shift
    - zero-pad the 1-wide head to `out_pad` lanes for lane-dense stores."""
    w1_t = jnp.asarray(w1, jnp.float32).T                       # (F_in, H)
    H = w1_t.shape[1]
    b1_2d = jnp.asarray(b1, jnp.float32).reshape(1, H)          # (1, H)

    scale_1d = jnp.asarray(gamma, jnp.float32) / jnp.sqrt(
        jnp.asarray(running_var, jnp.float32) + eps)            # (H,)
    shift_1d = jnp.asarray(beta, jnp.float32) - jnp.asarray(
        running_mean, jnp.float32) * scale_1d                   # (H,)
    scale = scale_1d.reshape(1, H)
    shift = shift_1d.reshape(1, H)

    w_head_t = jnp.asarray(w_head, jnp.float32).T               # (H, 1)
    n_out = w_head_t.shape[1]
    w2_pad = jnp.zeros((H, out_pad), jnp.float32).at[:, :n_out].set(w_head_t)
    b2_pad = jnp.zeros((1, out_pad), jnp.float32).at[0, :n_out].set(
        jnp.asarray(b_head, jnp.float32))

    return (w1_t, b1_2d, scale, shift, w2_pad, b2_pad, n_out)


# ----------------------------------------------------------------------------- wrapper
def latent_oracle_forward(x, params, *, block_b=128):
    """x: (B, F_in) f32.  params: output of prepare_latent_oracle_params()."""
    w1_t, b1_2d, scale, shift, w2_pad, b2_pad, n_out = params
    B, F_in = x.shape
    H = w1_t.shape[1]
    N_pad = w2_pad.shape[1]

    def round_up(a, m):
        return ((a + m - 1) // m) * m

    # Batch tile: at least 8 rows (sublane), at most block_b; pad B to a multiple.
    tb = min(block_b, round_up(B, 8))
    b_pad = round_up(B, tb)
    if b_pad != B:
        x = jnp.pad(x, ((0, b_pad - B), (0, 0)))
    grid = (pl.cdiv(b_pad, tb),)

    flops = 2 * b_pad * F_in * H + 2 * b_pad * H * N_pad
    bytes_accessed = 4 * (b_pad * F_in + F_in * H + 3 * H + H * N_pad + N_pad
                          + b_pad * N_pad)
    cost = pl.CostEstimate(flops=flops, transcendentals=0,
                           bytes_accessed=bytes_accessed)

    # Resident (per-grid-step constant) blocks: index_map ignores the batch index.
    resident = lambda shape: pl.BlockSpec(shape, lambda i: (0, 0))

    out = pl.pallas_call(
        latent_oracle_kernel,
        out_shape=jax.ShapeDtypeStruct((b_pad, N_pad), x.dtype),
        grid=grid,
        in_specs=[
            pl.BlockSpec((tb, F_in), lambda i: (i, 0)),   # batch-tiled activations
            resident((F_in, H)),                          # W1
            resident((1, H)),                             # b1
            resident((1, H)),                             # BN scale
            resident((1, H)),                             # BN shift
            resident((H, N_pad)),                         # head W (lane-padded)
            resident((1, N_pad)),                         # head b (lane-padded)
        ],
        out_specs=pl.BlockSpec((tb, N_pad), lambda i: (i, 0)),
        compiler_params=pltpu.CompilerParams(
            dimension_semantics=("parallel",)),           # megacore on v7x
        cost_estimate=cost,
    )(x, w1_t, b1_2d, scale, shift, w2_pad, b2_pad)

    # Strip batch padding and the lane padding of the 1-wide head.
    return out[:B, :n_out]


# --------------------------------------------------------------------------- utilities
def init_linear_params(key, in_features, out_features):
    """PyTorch nn.Linear default init: U(-1/sqrt(in), 1/sqrt(in))."""
    kw, kb = jax.random.split(key)
    bound = 1.0 / (in_features ** 0.5)
    w = jax.random.uniform(kw, (out_features, in_features),
                           minval=-bound, maxval=bound, dtype=jnp.float32)
    b = jax.random.uniform(kb, (out_features,),
                           minval=-bound, maxval=bound, dtype=jnp.float32)
    return w, b


def latent_oracle_reference(x, w1, b1, gamma, beta, mean, var, w_head, b_head,
                            eps=1e-5):
    h = x @ w1.T + b1
    h = (h - mean) / jnp.sqrt(var + eps) * gamma + beta
    h = jnp.maximum(h, 0.0)
    return h @ w_head.T + b_head


# --------------------------------------------------------------------------------- main
if __name__ == "__main__":
    key = jax.random.PRNGKey(0)
    keys = jax.random.split(key, 7)

    batch = 200                       # non-multiple of the 128-row tile -> pads to 256
    in_features = 32
    feature_multiplier = 8
    hidden = 16 * feature_multiplier  # 128 (lane-dense hidden)

    x = jax.random.normal(keys[0], (batch, in_features), dtype=jnp.float32)

    w1, b1 = init_linear_params(keys[1], in_features, hidden)
    w_head, b_head = init_linear_params(keys[2], hidden, 1)
    gamma = jax.random.uniform(keys[3], (hidden,), minval=0.5, maxval=1.5,
                               dtype=jnp.float32)
    beta = 0.1 * jax.random.normal(keys[4], (hidden,), dtype=jnp.float32)
    running_mean = 0.1 * jax.random.normal(keys[5], (hidden,), dtype=jnp.float32)
    running_var = jax.random.uniform(keys[6], (hidden,), minval=0.5, maxval=1.5,
                                     dtype=jnp.float32)

    # One-time parameter preparation (transposes / BN folding / lane padding).
    params = prepare_latent_oracle_params(w1, b1, gamma, beta,
                                          running_mean, running_var,
                                          w_head, b_head)

    out = latent_oracle_forward(x, params)
    jax.block_until_ready(out)

    ref = latent_oracle_reference(x, w1, b1, gamma, beta,
                                  running_mean, running_var, w_head, b_head)

    assert out.shape == (batch, 1), out.shape
    assert jnp.allclose(out, ref, atol=1e-4, rtol=1e-4), \
        float(jnp.max(jnp.abs(out - ref)))

    print("KERNEL_OK")
</pallas_src>

<mosaic_0001>
module attributes {stable_mosaic.version = 11 : i64} {
  func.func @latent_oracle_kernel(%arg0: i32, %arg1: memref<128x32xf32, #tpu.memory_space<vmem>>, %arg2: memref<32x128xf32, #tpu.memory_space<vmem>>, %arg3: memref<1x128xf32, #tpu.memory_space<vmem>>, %arg4: memref<1x128xf32, #tpu.memory_space<vmem>>, %arg5: memref<1x128xf32, #tpu.memory_space<vmem>>, %arg6: memref<128x128xf32, #tpu.memory_space<vmem>>, %arg7: memref<1x128xf32, #tpu.memory_space<vmem>>, %arg8: memref<128x128xf32, #tpu.memory_space<vmem>>) attributes {dimension_semantics = [#tpu.dimension_semantics<parallel>], iteration_bounds = array<i64: 2>, scalar_prefetch = 0 : i64, scratch_operands = 0 : i64, tpu.core_type = #tpu.core_type<tc>, window_params = [{transform_indices = @transform_0, window_bounds = array<i64: 128, 32>}, {pipeline_mode = #tpu.pipeline_mode<synchronous>, transform_indices = @transform_1, window_bounds = array<i64: 32, 128>}, {pipeline_mode = #tpu.pipeline_mode<synchronous>, transform_indices = @transform_2, window_bounds = array<i64: 1, 128>}, {pipeline_mode = #tpu.pipeline_mode<synchronous>, transform_indices = @transform_3, window_bounds = array<i64: 1, 128>}, {pipeline_mode = #tpu.pipeline_mode<synchronous>, transform_indices = @transform_4, window_bounds = array<i64: 1, 128>}, {pipeline_mode = #tpu.pipeline_mode<synchronous>, transform_indices = @transform_5, window_bounds = array<i64: 128, 128>}, {pipeline_mode = #tpu.pipeline_mode<synchronous>, transform_indices = @transform_6, window_bounds = array<i64: 1, 128>}, {transform_indices = @transform_7, window_bounds = array<i64: 128, 128>}]} {
    %c0 = arith.constant 0 : index
    %c0_0 = arith.constant 0 : index
    %0 = vector.load %arg1[%c0, %c0_0] : memref<128x32xf32, #tpu.memory_space<vmem>>, vector<128x32xf32>
    %c0_1 = arith.constant 0 : index
    %c0_2 = arith.constant 0 : index
    %1 = vector.load %arg2[%c0_1, %c0_2] : memref<32x128xf32, #tpu.memory_space<vmem>>, vector<32x128xf32>
    %cst = arith.constant dense<0.000000e+00> : vector<128x128xf32>
    %2 = tpu.matmul %0, %1, %cst {dimension_numbers = #tpu.dot_dimension_numbers<[1], [0], [0], [1], [0, 0, 1, 1], [], []>} : vector<128x32xf32>, vector<32x128xf32>, vector<128x128xf32> -> vector<128x128xf32>
    %c0_3 = arith.constant 0 : index
    %c0_4 = arith.constant 0 : index
    %3 = vector.load %arg3[%c0_3, %c0_4] : memref<1x128xf32, #tpu.memory_space<vmem>>, vector<1x128xf32>
    %4 = vector.broadcast %3 : vector<1x128xf32> to vector<128x128xf32>
    %5 = arith.addf %2, %4 : vector<128x128xf32>
    %c0_5 = arith.constant 0 : index
    %c0_6 = arith.constant 0 : index
    %6 = vector.load %arg4[%c0_5, %c0_6] : memref<1x128xf32, #tpu.memory_space<vmem>>, vector<1x128xf32>
    %7 = vector.broadcast %6 : vector<1x128xf32> to vector<128x128xf32>
    %8 = arith.mulf %5, %7 : vector<128x128xf32>
    %c0_7 = arith.constant 0 : index
    %c0_8 = arith.constant 0 : index
    %9 = vector.load %arg5[%c0_7, %c0_8] : memref<1x128xf32, #tpu.memory_space<vmem>>, vector<1x128xf32>
    %10 = vector.broadcast %9 : vector<1x128xf32> to vector<128x128xf32>
    %11 = arith.addf %8, %10 : vector<128x128xf32>
    %cst_9 = arith.constant 0.000000e+00 : f32
    %12 = vector.broadcast %cst_9 : f32 to vector<128x128xf32>
    %13 = arith.maximumf %11, %12 : vector<128x128xf32>
    %c0_10 = arith.constant 0 : index
    %c0_11 = arith.constant 0 : index
    %14 = vector.load %arg6[%c0_10, %c0_11] : memref<128x128xf32, #tpu.memory_space<vmem>>, vector<128x128xf32>
    %cst_12 = arith.constant dense<0.000000e+00> : vector<128x128xf32>
    %15 = tpu.matmul %13, %14, %cst_12 {dimension_numbers = #tpu.dot_dimension_numbers<[1], [0], [0], [1], [0, 0, 1, 1], [], []>} : vector<128x128xf32>, vector<128x128xf32>, vector<128x128xf32> -> vector<128x128xf32>
    %c0_13 = arith.constant 0 : index
    %c0_14 = arith.constant 0 : index
    %16 = vector.load %arg7[%c0_13, %c0_14] : memref<1x128xf32, #tpu.memory_space<vmem>>, vector<1x128xf32>
    %17 = vector.broadcast %16 : vector<1x128xf32> to vector<128x128xf32>
    %18 = arith.addf %15, %17 : vector<128x128xf32>
    %c0_15 = arith.constant 0 : index
    %c0_16 = arith.constant 0 : index
    %19 = vector.load %arg8[%c0_15, %c0_16] : memref<128x128xf32, #tpu.memory_space<vmem>>, vector<128x128xf32>
    tpu.vector_store %arg8[%c0_15, %c0_16], %18 {strides = array<i32>} : memref<128x128xf32, #tpu.memory_space<vmem>>, vector<128x128xf32>,
    return
  }
  func.func @transform_0(%arg0: i32) -> (i32, i32) {
    %c0_i32 = arith.constant 0 : i32
    %c0_i32_0 = arith.constant 0 : i32
    return %arg0, %c0_i32 : i32, i32
  }
  func.func @transform_1(%arg0: i32) -> (i32, i32) {
    %c0_i32 = arith.constant 0 : i32
    %c0_i32_0 = arith.constant 0 : i32
    %c0_i32_1 = arith.constant 0 : i32
    return %c0_i32, %c0_i32_0 : i32, i32
  }
  func.func @transform_2(%arg0: i32) -> (i32, i32) {
    %c0_i32 = arith.constant 0 : i32
    %c0_i32_0 = arith.constant 0 : i32
    %c0_i32_1 = arith.constant 0 : i32
    return %c0_i32, %c0_i32_0 : i32, i32
  }
  func.func @transform_3(%arg0: i32) -> (i32, i32) {
    %c0_i32 = arith.constant 0 : i32
    %c0_i32_0 = arith.constant 0 : i32
    %c0_i32_1 = arith.constant 0 : i32
    return %c0_i32, %c0_i32_0 : i32, i32
  }
  func.func @transform_4(%arg0: i32) -> (i32, i32) {
    %c0_i32 = arith.constant 0 : i32
    %c0_i32_0 = arith.constant 0 : i32
    %c0_i32_1 = arith.constant 0 : i32
    return %c0_i32, %c0_i32_0 : i32, i32
  }
  func.func @transform_5(%arg0: i32) -> (i32, i32) {
    %c0_i32 = arith.constant 0 : i32
    %c0_i32_0 = arith.constant 0 : i32
    %c0_i32_1 = arith.constant 0 : i32
    return %c0_i32, %c0_i32_0 : i32, i32
  }
  func.func @transform_6(%arg0: i32) -> (i32, i32) {
    %c0_i32 = arith.constant 0 : i32
    %c0_i32_0 = arith.constant 0 : i32
    %c0_i32_1 = arith.constant 0 : i32
    return %c0_i32, %c0_i32_0 : i32, i32
  }
  func.func @transform_7(%arg0: i32) -> (i32, i32) {
    %c0_i32 = arith.constant 0 : i32
    %c0_i32_0 = arith.constant 0 : i32
    return %arg0, %c0_i32 : i32, i32
  }
}

</mosaic_0001>

<bundles_post_ra>
// kernel: tpu_custom_call.1
= control target key start
LH: loop header
LB: loop body
LE: loop exit
PB: predicated region body
PF: predicated region fallthrough
CT: control target
= control target key end

     0   :  { %12 = vsyncpa [#allocation3], 0  ;;  %s1458_s0 = inlined_call_operand.vmem [shape: f32[256,32], index: 0, kind: input, shape index: {}]   ;;  %s1459_s1 = inlined_call_operand.vmem [shape: f32[32,128], index: 1, kind: input, shape index: {}]   ;;  %s1460_s2 = inlined_call_operand.vmem [shape: f32[1,128], index: 2, kind: input, shape index: {}]   ;;  %s1461_s3 = inlined_call_operand.vmem [shape: f32[1,128], index: 3, kind: input, shape index: {}]   ;;  %s1462_s4 = inlined_call_operand.vmem [shape: f32[1,128], index: 4, kind: input, shape index: {}]   ;;  %s1463_s5 = inlined_call_operand.vmem [shape: f32[128,128], index: 5, kind: input, shape index: {}]   ;;  %s1464_s6 = inlined_call_operand.vmem [shape: f32[1,128], index: 6, kind: input, shape index: {}]   ;;  %s1465_s7 = inlined_call_operand.hbm [shape: f32[256,128], index: 7, kind: output, shape index: {}]  }
   0x1   :  { %14 = vsyncpa [#allocation3 + $0x1], 0  ;;  %s1174_s24 = smov 0   ;;  %s1176_s25 = smov 0  }
   0x2   :  { %s1178_s26 = smov 0   ;;  %s1180_s27 = smov 0  }
   0x3 LB: > { %s1195_s28 = sadd.s32 4294967295, %s1129_s27   ;;  %s823_s29 = sadd.s32 4294967294, %s1129_s27   ;;  %s1129_s27 = sphi %s1180_s27, %s1471_s27   ;;  %s1125_s26 = sphi %s1178_s26, %s1470_s26   ;;  %s1121_s25 = sphi %s1176_s25, %s1469_s25   ;;  %s1117_s24 = sphi %s1174_s24, %s1468_s24  }
   0x4   : > { %s1199_s30 = sadd.s32 1, %s1129_s27   ;;  %s179_s8 = sadd.s32 1, %s1125_s26 }
   0x5   : > { %s176_s9 = ssub.s32 %s1129_s27, %s1199_s30  ;;  %p189_p0 = scmp.ne.s32.totalorder %s1125_s26, %s1121_s25 }
   0x6   : > { %p177_p1 = scmp.eq.s32.totalorder %s176_s9, 0  ;;  %p190_p2 = scmp.eq.s32.totalorder %s1195_s28, 1 }
   0x7   : > { %p195_p3 = scmp.ne.s32.totalorder %s1121_s25, %s1117_s24  ;;  %p196_p4 = scmp.eq.s32.totalorder %s823_s29, 1 }
   0x8   : > { %s1210_s10 = scalar_select %p177_p1, %s1125_s26, %s179_s8  }
   0x9   : > { %p1212_p5 = por %p190_p2, %p189_p0  ;;  %p1216_p6 = por %p196_p4, %p195_p3 }
   0xa   : > { %p826_p7 = scmp.ge.s32.totalorder %s1129_s27, 1  ;;  %p241_p8 = scmp.lt.s32.totalorder %s1129_s27, 3 }
   0xc   : > { %p242_p9 = pnand %p826_p7, %p241_p8 }
   0xd   : > { %s828_s17 = sshll.u32 (!%p242_p9), %s1195_s28, 4  ;;  %s270_s23 = sand.u32 (!%p242_p9), 1, %s1121_s25  }
   0xe   : > { %245 = sbr.rel (%p242_p9) target bundleno = 471 (0x1d7), region = 48  ;;  %p274_p10 = scmp.lt.s32.totalorder (!%p242_p9), %s828_s17, 31 }
   0xf   : > { %s827_s29 = sshll.u32 (!%p242_p9), %s270_s23, 7  ;;  %s855_s13 = sshll.u32 (!%p242_p9), %s1195_s28, 11 }
  0x10   : > { %s1418_s28 = scalar_lea.sflag (!%p242_p9), [#allocation3], %s270_s23  ;;  %s1131_s20 = smov (!%p242_p9), [#allocation2]  }
  0x11   : > { %s1073_s21 = sshll.u32 (!%p242_p9), %s1131_s20, 4  ;;  %s1074_s21 = int_to_ptr.vmem [resolvable:$false] %s1073_s21 }
  0x12   : > { %s1075_s22 = scalar_lea.vmem (!%p242_p9), %s1074_s21, 4096 }
  0x13   : > { %v299_v0 = vld [vmem:[%s1459_s1 + $0x18] sm:$0xff]  ;;  %v298_v1 = vld [vmem:[%s1459_s1 + $0x10] sm:$0xff]  ;;  %v297_v3 = vld [vmem:[%s1459_s1 + $0x8] sm:$0xff]  ;;  %s1473_s17 = smov (!%p274_p10, %s828_s17), 31  ;;  %vm307_vm0 = vcmask 261120  }
  0x14   : > { %908 = vmatprep.subr.mxu0 %v299_v0  ;;  %v578_v2 = vld [vmem:[%s1463_s5 + $0x78] sm:$0xff]  ;;  %v577_v4 = vld [vmem:[%s1463_s5 + $0x70] sm:$0xff]  ;;  %v296_v5 = vld [vmem:[%s1459_s1] sm:$0xff]  ;;  %s829_s9 = sshll.u32 %s1473_s17, 3  ;;  %s1410_s17 = scalar_lea.hbm %s1465_s7, %s855_s13 }
  0x15   : > { %909 = vmatpush3.msra.mxu0 %v299_v0  ;;  %996 = vmatprep.subr.mxu1 %v578_v2  ;;  %v576_v6 = vld [vmem:[%s1463_s5 + $0x68] sm:$0xff]  ;;  %s1247_s18 = scalar_lea.vmem %s1458_s0, %s829_s9  ;;  %v575_v11 = vld [vmem:[%s1463_s5 + $0x60] sm:$0xff]  ;;  %v574_v14 = vld [vmem:[%s1463_s5 + $0x58] sm:$0xff]  ;;  %s1389_s9 = scalar_lea.vmem [#allocation2], %s827_s29 }
  0x16   : > { %910 = vmatprep.subr.mxu0 %v298_v1  ;;  %1012 = vmatpush3.msra.mxu1 %v578_v2  ;;  %v280_v7 = vld [vmem:[%s1247_s18] sm:$0xff]  ;;  %v281_v8 = vld [vmem:[%s1247_s18 + $0x8] sm:$0xff]  ;;  %v282_v9 = vld [vmem:[%s1247_s18 + $0x10] sm:$0xff]  ;;  %s761_s14 = sshll.u32 %s1389_s9, 4  ;;  %s1412_s14 = int_to_ptr.vmem [resolvable:$true] %s761_s14 }
  0x17   : > { %911 = vmatpush3.msra.mxu0 %v298_v1  ;;  %997 = vmatprep.subr.mxu1 %v577_v4  ;;  %v283_v10 = vld [vmem:[%s1247_s18 + $0x18] sm:$0xff]  ;;  %v284_v12 = vld [vmem:[%s1247_s18 + $0x20] sm:$0xff]  ;;  %v285_v13 = vld [vmem:[%s1247_s18 + $0x28] sm:$0xff]  ;;  %s1069_s19 = scalar_lea.vmem %s1412_s14, 2048  ;;  %p1076_p0 = scmp.lt.s32.totalorder %s1412_s14, %s1074_s21 }
  0x18   : > { %912 = vmatprep.subr.mxu0 %v297_v3  ;;  %1013 = vmatpush3.msra.mxu1 %v577_v4  ;;  %v286_v15 = vld [vmem:[%s1247_s18 + $0x30] sm:$0xff]  ;;  %v287_v17 = vld [vmem:[%s1247_s18 + $0x38] sm:$0xff]  ;;  %v572_v18 = vld [vmem:[%s1463_s5 + $0x48] sm:$0xff]  ;;  %p1070_p11 = scmp.ne.s32.totalorder %s1412_s14, %s1069_s19  ;;  %p1077_p1 = scmp.lt.s32.totalorder %s1075_s22, %s1069_s19 }
  0x19   : > { %913 = vmatpush3.msra.mxu0 %v297_v3  ;;  %998 = vmatprep.subr.mxu1 %v576_v6  ;;  %v573_v16 = vld [vmem:[%s1463_s5 + $0x50] sm:$0xff]  ;;  %v288_v19 = vld [vmem:[%s1247_s18 + $0x40] sm:$0xff]  ;;  %v289_v21 = vld [vmem:[%s1247_s18 + $0x48] sm:$0xff] }
  0x1a   : > { %914 = vmatprep.subr.mxu0 %v296_v5  ;;  %1014 = vmatpush3.msra.mxu1 %v576_v6  ;;  %v571_v20 = vld [vmem:[%s1463_s5 + $0x40] sm:$0xff]  ;;  %v570_v22 = vld [vmem:[%s1463_s5 + $0x38] sm:$0xff]  ;;  %v290_v23 = vld [vmem:[%s1247_s18 + $0x50] sm:$0xff]  ;;  %p1071_p12 = pnand %p1070_p11, %p1212_p5  ;;  %p1078_p2 = por %p1077_p1, %p1076_p0 }
  0x1b   : > { %915 = vmatpush3.msra.mxu0 %v296_v5  ;;  %916 = vmatprep.mubr.msk.f32.mxu0 %vm307_vm0, %v280_v7  ;;  %v569_v24 = vld [vmem:[%s1463_s5 + $0x30] sm:$0xff]  ;;  %v291_v25 = vld [vmem:[%s1247_s18 + $0x58] sm:$0xff]  ;;  %v292_v26 = vld [vmem:[%s1247_s18 + $0x60] sm:$0xff] }
  0x1c   : > { %917 = vmatmul.mubr.msk.f32.vlgmr.msra.gmra.mxu0 %vm307_vm0, %v281_v8  ;;  %940 = vmatprep.subr.mxu0 %v578_v2  ;;  %v293_v27 = vld [vmem:[%s1247_s18 + $0x68] sm:$0xff]  ;;  %v294_v28 = vld [vmem:[%s1247_s18 + $0x70] sm:$0xff]  ;;  %v295_v29 = vld [vmem:[%s1247_s18 + $0x78] sm:$0xff]  ;;  %p1072_p13 = pneg %p1071_p12 }
  0x1d   : > { %919 = vmatprep.mubr.msk.f32.mxu0 %vm307_vm0, %v282_v9  ;;  %941 = vmatpush3.msra.mxu0 %v578_v2  ;;  %v568_v30 = vld [vmem:[%s1463_s5 + $0x28] sm:$0xff]  ;;  %v567_v31 = vld [vmem:[%s1463_s5 + $0x20] sm:$0xff]  ;;  %v566_v32 = vld [vmem:[%s1463_s5 + $0x18] sm:$0xff] }
  0x1e   : > { %942 = vmatprep.subr.mxu0 %v577_v4  ;;  %999 = vmatprep.subr.mxu1 %v575_v11  ;;  %v565_v33 = vld [vmem:[%s1463_s5 + $0x10] sm:$0xff]  ;;  %v564_v34 = vld [vmem:[%s1463_s5 + $0x8] sm:$0xff]  ;;  %v563_v35 = vld [vmem:[%s1463_s5] sm:$0xff]  ;;  %p1079_p3 = pnand %p1078_p2, %p1072_p13 }
  0x1f   : > { %943 = vmatpush3.msra.mxu0 %v577_v4  ;;  %1015 = vmatpush3.msra.mxu1 %v575_v11  ;;  %v1323_v36 = vld [vmem:[%s1460_s2] ss:$0 sm:$0xff] }
  0x20   : > { %920 = vmatmul.mubr.msk.f32.gmra.mxu0 %vm307_vm0, %v283_v10  ;;  %944 = vmatprep.subr.mxu0 %v576_v6  ;;  %v1328_v38 = vld [vmem:[%s1461_s3] ss:$0 sm:$0xff] }
  0x21   : > { %922 = vmatprep.mubr.msk.f32.mxu0 %vm307_vm0, %v284_v12  ;;  %945 = vmatpush3.msra.mxu0 %v576_v6  ;;  %v1335_v42 = vld [vmem:[%s1462_s4] ss:$0 sm:$0xff] }
  0x22   : > { %946 = vmatprep.subr.mxu0 %v575_v11  ;;  %1000 = vmatprep.subr.mxu1 %v574_v14 }
  0x23   : > { %947 = vmatpush3.msra.mxu0 %v575_v11  ;;  %1016 = vmatpush3.msra.mxu1 %v574_v14 }
  0x24   : > { %923 = vmatmul.mubr.msk.f32.gmra.mxu0 %vm307_vm0, %v285_v13  ;;  %948 = vmatprep.subr.mxu0 %v574_v14 }
  0x25   : > { %925 = vmatprep.mubr.msk.f32.mxu0 %vm307_vm0, %v286_v15  ;;  %949 = vmatpush3.msra.mxu0 %v574_v14 }
  0x26   : > { %950 = vmatprep.subr.mxu0 %v573_v16  ;;  %1001 = vmatprep.subr.mxu1 %v573_v16 }
  0x27   : > { %951 = vmatpush3.msra.mxu0 %v573_v16  ;;  %1017 = vmatpush3.msra.mxu1 %v573_v16 }
  0x28   : > { %926 = vmatmul.mubr.msk.f32.gmra.mxu0 %vm307_vm0, %v287_v17  ;;  %952 = vmatprep.subr.mxu0 %v572_v18 }
  0x29   : > { %928 = vmatprep.mubr.msk.f32.mxu0 %vm307_vm0, %v288_v19  ;;  %953 = vmatpush3.msra.mxu0 %v572_v18 }
  0x2a   : > { %954 = vmatprep.subr.mxu0 %v571_v20  ;;  %1002 = vmatprep.subr.mxu1 %v572_v18 }
  0x2b   : > { %955 = vmatpush3.msra.mxu0 %v571_v20  ;;  %1018 = vmatpush3.msra.mxu1 %v572_v18 }
  0x2c   : > { %929 = vmatmul.mubr.msk.f32.gmra.mxu0 %vm307_vm0, %v289_v21  ;;  %956 = vmatprep.subr.mxu0 %v570_v22 }
  0x2d   : > { %931 = vmatprep.mubr.msk.f32.mxu0 %vm307_vm0, %v290_v23  ;;  %957 = vmatpush3.msra.mxu0 %v570_v22 }
  0x2e   : > { %958 = vmatprep.subr.mxu0 %v569_v24  ;;  %1003 = vmatprep.subr.mxu1 %v571_v20 }
  0x2f   : > { %959 = vmatpush3.msra.mxu0 %v569_v24  ;;  %1019 = vmatpush3.msra.mxu1 %v571_v20 }
  0x30   : > { %932 = vmatmul.mubr.msk.f32.gmra.mxu0 %vm307_vm0, %v291_v25  ;;  %1004 = vmatprep.subr.mxu1 %v570_v22 }
  0x31   : > { %934 = vmatprep.mubr.msk.f32.mxu0 %vm307_vm0, %v292_v26  ;;  %1020 = vmatpush3.msra.mxu1 %v570_v22 }
  0x32   : > { %1005 = vmatprep.subr.mxu1 %v569_v24  ;;  %960 = vmatprep.subr.mxu0 %v568_v30 }
  0x33   : > { %1021 = vmatpush3.msra.mxu1 %v569_v24  ;;  %961 = vmatpush3.msra.mxu0 %v568_v30 }
  0x34   : > { %935 = vmatmul.mubr.msk.f32.gmra.mxu0 %vm307_vm0, %v293_v27  ;;  %1006 = vmatprep.subr.mxu1 %v568_v30 }
  0x35   : > { %937 = vmatprep.mubr.msk.f32.mxu0 %vm307_vm0, %v294_v28  ;;  %1022 = vmatpush3.msra.mxu1 %v568_v30 }
  0x36   : > { %962 = vmatprep.subr.mxu0 %v567_v31  ;;  %1007 = vmatprep.subr.mxu1 %v567_v31 }
  0x37   : > { %963 = vmatpush3.msra.mxu0 %v567_v31  ;;  %1023 = vmatpush3.msra.mxu1 %v567_v31 }
  0x38   : > { %938 = vmatmul.mubr.msk.f32.gmra.mxu0 %vm307_vm0, %v295_v29  ;;  %964 = vmatprep.subr.mxu0 %v566_v32 }
  0x39   : > { %1008 = vmatprep.subr.mxu1 %v566_v32  ;;  %965 = vmatpush3.msra.mxu0 %v566_v32 }
  0x3a   : > { %1024 = vmatpush3.msra.mxu1 %v566_v32  ;;  %966 = vmatprep.subr.mxu0 %v565_v33 }
  0x3b   : > { %1009 = vmatprep.subr.mxu1 %v565_v33  ;;  %967 = vmatpush3.msra.mxu0 %v565_v33 }
  0x3c   : > { %1025 = vmatpush3.msra.mxu1 %v565_v33  ;;  %968 = vmatprep.subr.mxu0 %v564_v34 }
  0x3d   : > { %1010 = vmatprep.subr.mxu1 %v564_v34  ;;  %969 = vmatpush3.msra.mxu0 %v564_v34 }
  0x3e   : > { %1026 = vmatpush3.msra.mxu1 %v564_v34  ;;  %970 = vmatprep.subr.mxu0 %v563_v35 }
  0x3f   : > { %1011 = vmatprep.subr.mxu1 %v563_v35  ;;  %971 = vmatpush3.msra.mxu0 %v563_v35 }
  0x40   : > { %1027 = vmatpush3.msra.mxu1 %v563_v35 }
  0xdc   : > { %v918_v37 = vpop.f32.mrf.mxu0 }
  0xdd   : > { %v428_v39 = vadd.f32 %v918_v37, %v1323_v36 }
  0xde   : > { %v422_v40 = vpop.f32.mrf.mxu0 }
  0xdf   : > { %v509_v41 = vmul.f32 %v1328_v38, %v428_v39  ;;  %v423_v43 = vadd.f32 %v1323_v36, %v422_v40 }
  0xe0   : > { %v921_v44 = vpop.f32.mrf.mxu0 }
  0xe1   : > { %v508_v45 = vmul.f32 %v1328_v38, %v423_v43  ;;  %v438_v46 = vadd.f32 %v921_v44, %v1323_v36  ;;  %v532_v47 = vadd.f32 %v1335_v42, %v509_v41 }
  0xe2   : > { %v432_v48 = vpop.f32.mrf.mxu0 }
  0xe3   : > { %v511_v49 = vmul.f32 %v1328_v38, %v438_v46  ;;  %v433_v50 = vadd.f32 %v1323_v36, %v432_v48  ;;  %v531_v51 = vadd.f32 %v1335_v42, %v508_v45  ;;  %v548_v56 = vmax.f32 %v532_v47, 0.0 }
  0xe4   : > { %v924_v52 = vpop.f32.mrf.mxu0 }
  0xe5   : > { %v510_v53 = vmul.f32 %v1328_v38, %v433_v50  ;;  %v448_v54 = vadd.f32 %v924_v52, %v1323_v36  ;;  %v547_v55 = vmax.f32 %v531_v51, 0.0  ;;  %v534_v58 = vadd.f32 %v1335_v42, %v511_v49 }
  0xe6   : > { %v442_v57 = vpop.f32.mrf.mxu0 }
  0xe7   : > { %v513_v59 = vmul.f32 %v1328_v38, %v448_v54  ;;  %v443_v60 = vadd.f32 %v1323_v36, %v442_v57  ;;  %972 = vmatprep.mubr.f32.mxu0 %v547_v55  ;;  %v533_v61 = vadd.f32 %v1335_v42, %v510_v53  ;;  %v550_v3 = vmax.f32 %v534_v58, 0.0 }
  0xe8   : > { %v927_v62 = vpop.f32.mrf.mxu0  ;;  %973 = vmatmul.mubr.f32.vlgmr.msra.gmra.mxu0 %v548_v56 }
  0xe9   : > { %v512_v63 = vmul.f32 %v1328_v38, %v443_v60  ;;  %v458_v0 = vadd.f32 %v927_v62, %v1323_v36  ;;  %v549_v1 = vmax.f32 %v533_v61, 0.0  ;;  %v536_v4 = vadd.f32 %v1335_v42, %v513_v59 }
  0xea   : > { %v452_v2 = vpop.f32.mrf.mxu0 }
  0xeb   : > { %v515_v5 = vmul.f32 %v1328_v38, %v458_v0  ;;  %v453_v6 = vadd.f32 %v1323_v36, %v452_v2  ;;  %975 = vmatprep.mubr.f32.mxu0 %v549_v1  ;;  %v535_v7 = vadd.f32 %v1335_v42, %v512_v63  ;;  %v552_v13 = vmax.f32 %v536_v4, 0.0 }
  0xec   : > { %v930_v8 = vpop.f32.mrf.mxu0  ;;  %976 = vmatmul.mubr.f32.gmra.mxu0 %v550_v3 }
  0xed   : > { %v468_v9 = vadd.f32 %v930_v8, %v1323_v36  ;;  %v551_v10 = vmax.f32 %v535_v7, 0.0  ;;  %v514_v11 = vmul.f32 %v1328_v38, %v453_v6  ;;  %v538_v14 = vadd.f32 %v1335_v42, %v515_v5 }
  0xee   : > { %v462_v12 = vpop.f32.mrf.mxu0 }
  0xef   : > { %v517_v15 = vmul.f32 %v1328_v38, %v468_v9  ;;  %v463_v16 = vadd.f32 %v1323_v36, %v462_v12  ;;  %978 = vmatprep.mubr.f32.mxu0 %v551_v10  ;;  %v537_v17 = vadd.f32 %v1335_v42, %v514_v11  ;;  %v554_v23 = vmax.f32 %v538_v14, 0.0 }
  0xf0   : > { %v933_v18 = vpop.f32.mrf.mxu0  ;;  %979 = vmatmul.mubr.f32.gmra.mxu0 %v552_v13 }
  0xf1   : > { %v516_v19 = vmul.f32 %v1328_v38, %v463_v16  ;;  %v478_v20 = vadd.f32 %v933_v18, %v1323_v36  ;;  %v553_v21 = vmax.f32 %v537_v17, 0.0  ;;  %v540_v24 = vadd.f32 %v1335_v42, %v517_v15 }
  0xf2   : > { %v472_v22 = vpop.f32.mrf.mxu0 }
  0xf3   : > { %v519_v25 = vmul.f32 %v1328_v38, %v478_v20  ;;  %v473_v26 = vadd.f32 %v1323_v36, %v472_v22  ;;  %981 = vmatprep.mubr.f32.mxu1 %v553_v21  ;;  %v539_v27 = vadd.f32 %v1335_v42, %v516_v19  ;;  %v556_v33 = vmax.f32 %v540_v24, 0.0 }
  0xf4   : > { %v936_v28 = vpop.f32.mrf.mxu0  ;;  %982 = vmatmul.mubr.f32.vlgmr.msra.gmra.mxu1 %v554_v23 }
  0xf5   : > { %v518_v29 = vmul.f32 %v1328_v38, %v473_v26  ;;  %v488_v30 = vadd.f32 %v936_v28, %v1323_v36  ;;  %v555_v31 = vmax.f32 %v539_v27, 0.0  ;;  %v542_v34 = vadd.f32 %v1335_v42, %v519_v25 }
  0xf6   : > { %v482_v32 = vpop.f32.mrf.mxu0 }
  0xf7   : > { %v521_v35 = vmul.f32 %v1328_v38, %v488_v30  ;;  %v483_v37 = vadd.f32 %v1323_v36, %v482_v32  ;;  %984 = vmatprep.mubr.f32.mxu1 %v555_v31  ;;  %v541_v39 = vadd.f32 %v1335_v42, %v518_v29  ;;  %v558_v46 = vmax.f32 %v542_v34, 0.0 }
  0xf8   : > { %v939_v40 = vpop.f32.mrf.mxu0  ;;  %985 = vmatmul.mubr.f32.gmra.mxu1 %v556_v33 }
  0xf9   : > { %v520_v41 = vmul.f32 %v1328_v38, %v483_v37  ;;  %v498_v43 = vadd.f32 %v939_v40, %v1323_v36  ;;  %v557_v44 = vmax.f32 %v541_v39, 0.0  ;;  %v544_v47 = vadd.f32 %v1335_v42, %v521_v35 }
  0xfa   : > { %v492_v45 = vpop.f32.mrf.mxu0 }
  0xfb   : > { %v523_v48 = vmul.f32 %v1328_v38, %v498_v43  ;;  %v493_v49 = vadd.f32 %v1323_v36, %v492_v45  ;;  %987 = vmatprep.mubr.f32.mxu1 %v557_v44  ;;  %v543_v50 = vadd.f32 %v1335_v42, %v520_v41  ;;  %v560_v53 = vmax.f32 %v544_v47, 0.0  ;;  %v849_v36 = vld [vmem:[%s1464_s6] ss:$0 sm:$0xff] }
  0xfc   : > { %988 = vmatmul.mubr.f32.gmra.mxu1 %v558_v46 }
  0xfd   : > { %v522_v51 = vmul.f32 %v1328_v38, %v493_v49  ;;  %v559_v52 = vmax.f32 %v543_v50, 0.0  ;;  %v546_v54 = vadd.f32 %v1335_v42, %v523_v48 }
  0xff   : > { %990 = vmatprep.mubr.f32.mxu1 %v559_v52  ;;  %v545_v55 = vadd.f32 %v1335_v42, %v522_v51  ;;  %v562_v57 = vmax.f32 %v546_v54, 0.0 }
 0x100   : > { %991 = vmatmul.mubr.f32.gmra.mxu1 %v560_v53 }
 0x101   : > { %v561_v56 = vmax.f32 %v545_v55, 0.0 }
 0x103   : > { %993 = vmatprep.mubr.f32.mxu1 %v561_v56 }
 0x104   : > { %994 = vmatmul.mubr.f32.gmra.mxu1 %v562_v57 }
 0x1a8   : > { %v974_v38 = vpop.f32.mrf.mxu0 }
 0x1a9   : > { %v658_v58 = vadd.f32 %v974_v38, %v849_v36 }
 0x1aa   : > { %v652_v59 = vpop.f32.mrf.mxu0 }
 0x1ab   : > { %732 = vst [vmem:[%s1389_s9 + $0x8] sm:$0xff] %v658_v58  ;;  %v653_v42 = vadd.f32 %v849_v36, %v652_v59 }
 0x1ac   : > { %v977_v60 = vpop.f32.mrf.mxu0 }
 0x1ad   : > { %731 = vst [vmem:[%s1389_s9] sm:$0xff] %v653_v42  ;;  %v668_v61 = vadd.f32 %v977_v60, %v849_v36 }
 0x1ae   : > { %v662_v62 = vpop.f32.mrf.mxu0 }
 0x1af   : > { %734 = vst [vmem:[%s1389_s9 + $0x18] sm:$0xff] %v668_v61  ;;  %v663_v63 = vadd.f32 %v849_v36, %v662_v62 }
 0x1b0   : > { %v980_v0 = vpop.f32.mrf.mxu0 }
 0x1b1   : > { %733 = vst [vmem:[%s1389_s9 + $0x10] sm:$0xff] %v663_v63  ;;  %v678_v1 = vadd.f32 %v980_v0, %v849_v36 }
 0x1b2   : > { %v672_v2 = vpop.f32.mrf.mxu0 }
 0x1b3   : > { %736 = vst [vmem:[%s1389_s9 + $0x28] sm:$0xff] %v678_v1  ;;  %v673_v3 = vadd.f32 %v849_v36, %v672_v2 }
 0x1b4   : > { %v983_v4 = vpop.f32.mrf.mxu1 }
 0x1b5   : > { %735 = vst [vmem:[%s1389_s9 + $0x20] sm:$0xff] %v673_v3  ;;  %v688_v5 = vadd.f32 %v983_v4, %v849_v36 }
 0x1b6   : > { %v682_v6 = vpop.f32.mrf.mxu1 }
 0x1b7   : > { %738 = vst [vmem:[%s1389_s9 + $0x38] sm:$0xff] %v688_v5  ;;  %v683_v7 = vadd.f32 %v849_v36, %v682_v6 }
 0x1b8   : > { %v986_v8 = vpop.f32.mrf.mxu1 }
 0x1b9   : > { %737 = vst [vmem:[%s1389_s9 + $0x30] sm:$0xff] %v683_v7  ;;  %v698_v9 = vadd.f32 %v986_v8, %v849_v36 }
 0x1ba   : > { %v692_v10 = vpop.f32.mrf.mxu1 }
 0x1bb   : > { %740 = vst [vmem:[%s1389_s9 + $0x48] sm:$0xff] %v698_v9  ;;  %v693_v11 = vadd.f32 %v849_v36, %v692_v10 }
 0x1bc   : > { %v989_v12 = vpop.f32.mrf.mxu1 }
 0x1bd   : > { %739 = vst [vmem:[%s1389_s9 + $0x40] sm:$0xff] %v693_v11  ;;  %v708_v13 = vadd.f32 %v989_v12, %v849_v36 }
 0x1be   : > { %v702_v14 = vpop.f32.mrf.mxu1 }
 0x1bf   : > { %742 = vst [vmem:[%s1389_s9 + $0x58] sm:$0xff] %v708_v13  ;;  %v703_v15 = vadd.f32 %v849_v36, %v702_v14 }
 0x1c0   : > { %v992_v16 = vpop.f32.mrf.mxu1 }
 0x1c1   : > { %741 = vst [vmem:[%s1389_s9 + $0x50] sm:$0xff] %v703_v15  ;;  %v718_v17 = vadd.f32 %v992_v16, %v849_v36 }
 0x1c2   : > { %v712_v18 = vpop.f32.mrf.mxu1 }
 0x1c3   : > { %744 = vst [vmem:[%s1389_s9 + $0x68] sm:$0xff] %v718_v17  ;;  %v713_v19 = vadd.f32 %v849_v36, %v712_v18 }
 0x1c4   : > { %v995_v20 = vpop.f32.mrf.mxu1 }
 0x1c5   : > { %743 = vst [vmem:[%s1389_s9 + $0x60] sm:$0xff] %v713_v19  ;;  %v728_v21 = vadd.f32 %v995_v20, %v849_v36 }
 0x1c6   : > { %v722_v22 = vpop.f32.mrf.mxu1 }
 0x1c7   : > { %746 = vst [vmem:[%s1389_s9 + $0x78] sm:$0xff] %v728_v21  ;;  %v723_v23 = vadd.f32 %v849_v36, %v722_v22 }
 0x1c9   : > { %745 = vst [vmem:[%s1389_s9 + $0x70] sm:$0xff] %v723_v23 }
 0x1ca   : > { %1082 = shalt.err (!%p1079_p3)
}
 0x1cb   : > { %s1083_s23 = scalar_lea.hbm %s1410_s17, 2048  ;;  %s1087_s8 = scalar_lea.hbm %s1465_s7, 4096 }
 0x1cc   : > { %p1084_p4 = scmp.ne.s32.totalorder %s1410_s17, %s1083_s23  ;;  %p1088_p9 = scmp.lt.s32.totalorder %s1410_s17, %s1465_s7 }
 0x1cd   : > { %p1089_p10 = scmp.lt.s32.totalorder %s1087_s8, %s1083_s23 }
 0x1ce   : > { %p1085_p7 = pnand %p1084_p4, %p1212_p5 }
 0x1cf   : > { %p1090_p11 = por %p1089_p10, %p1088_p9 }
 0x1d0   : > { %p1086_p8 = pneg %p1085_p7 }
 0x1d2   : > { %p1091_p12 = pnand %p1090_p11, %p1086_p8 }
 0x1d4   : > { %1094 = shalt.err (!%p1091_p12)
}
 0x1d5   : > { %s1132_s15 = smov 128   ;;  %s1133_s16 = smov 8  }
 0x1d6   : > { %1028 = dma.vmem_to_hbm [thread:$0]  (%p1212_p5), %s1412_s14, 2048, %s1410_s17, %s1418_s28, %s1132_s15, %s1132_s15, %s1133_s16  }
 0x1d7 PF: > { %p1034_p13 = scmp.ge.s32.totalorder %s1129_s27, 2  ;;  %s776_s19 = sand.u32 1, %s1117_s24  }
 0x1d8   : > { %s777_s20 = scalar_lea.sflag [#allocation3], %s776_s19 }
 0x1d9   : > { %p1031_p0 = pnand %p1034_p13, %p1216_p6 }
 0x1db   : > { %p1032_p1 = pneg %p1031_p0 }
 0x1dd   : > { %1112 = dma.done.wait (%p1032_p1), %s777_s20, 2048  }
 0x1de   : > { %1114 = vsyncadd (%p1032_p1), %s777_s20, 4294965248  ;;  %p17_p2 = scmp.ge.s32.totalorder %s1199_s30, 4   ;;  %s1468_s24 = smov %s1121_s25 }
 0x1df   : > { %s1469_s25 = smov %s1125_s26  ;;  %s1470_s26 = smov %s1210_s10 }
 0x1e0   : > { %s1471_s27 = smov %s1199_s30  ;;  %19 = sbr.rel (!%p17_p2) target bundleno = 3 (0x3), region = 83 }
 0x1e5   :  { %782 = vsyncpa [#allocation3], 1 }
 0x1e6   :  { %784 = vsyncpa [#allocation3 + $0x1], 1 }

</bundles_post_ra>
